<compile_context>
chip_gen: v6e
topology: v6e:2x2x1
jax: 0.10.0
libtpu: 0.0.40
codegen_flags: <defaults>
</compile_context>

<pallas_src>
import jax
import jax.numpy as jnp
from jax.experimental import pallas as pl
from jax.experimental.pallas import tpu as pltpu

input_size = 2
hidden_size1 = 5
hidden_size2 = 5
output_size = 1

# --- packed parameter buffer layout (single (8, 128) f32 slab) -------------
# Weights are stored in torch layout (out_features, in_features); biases as
# (out_features, 1) columns.  Everything lives in the first 15 lanes.
PACK_ROWS, PACK_COLS = 8, 128
W1_C = 0
B1_C = W1_C + input_size           # 2
W2_C = B1_C + 1                    # 3
B2_C = W2_C + hidden_size1         # 8
W3_C = B2_C + 1                    # 9
B3_C = W3_C + hidden_size2         # 14
assert B3_C + 1 <= PACK_COLS and max(hidden_size1, hidden_size2, output_size) <= PACK_ROWS


def pack_params(params):
    buf = jnp.zeros((PACK_ROWS, PACK_COLS), jnp.float32)
    buf = buf.at[:hidden_size1, W1_C:W1_C + input_size].set(params["w1"])
    buf = buf.at[:hidden_size1, B1_C:B1_C + 1].set(params["b1"])
    buf = buf.at[:hidden_size2, W2_C:W2_C + hidden_size1].set(params["w2"])
    buf = buf.at[:hidden_size2, B2_C:B2_C + 1].set(params["b2"])
    buf = buf.at[:output_size, W3_C:W3_C + hidden_size2].set(params["w3"])
    buf = buf.at[:output_size, B3_C:B3_C + 1].set(params["b3"])
    return buf


def mlp_kernel(params_ref, x_ref, o_ref):
    # params_ref: (8, 128) packed weights/biases (resident, same block each step)
    # x_ref:      (input_size, bb)   -- batch on the lane axis (lane-dense)
    # o_ref:      (output_size, bb)  -- lane-dense unmasked stores
    p = params_ref[...]
    x = x_ref[...].astype(jnp.float32)
    bb = x.shape[1]

    w1 = p[:hidden_size1, W1_C:W1_C + input_size]
    b1 = p[:hidden_size1, B1_C:B1_C + 1]
    w2 = p[:hidden_size2, W2_C:W2_C + hidden_size1]
    b2 = p[:hidden_size2, B2_C:B2_C + 1]
    w3 = p[:output_size, W3_C:W3_C + hidden_size2]
    b3 = p[:output_size, B3_C:B3_C + 1]

    def affine(w, b, h):
        # (out_f, in_f) @ (in_f, bb) + (out_f, 1), fully unrolled as VPU
        # broadcast-FMA over the tiny contraction dim -- avoids a padded,
        # <4%-utilized MXU pass per layer.
        out_f, in_f = w.shape
        acc = jnp.broadcast_to(b, (out_f, bb))
        for k in range(in_f):
            acc = acc + w[:, k:k + 1] * h[k:k + 1, :]
        return acc

    h1 = jax.nn.sigmoid(affine(w1, b1, x))      # (5, bb)
    h2 = jax.nn.sigmoid(affine(w2, b2, h1))     # (5, bb)
    o_ref[...] = affine(w3, b3, h2).astype(o_ref.dtype)   # (1, bb)


def _round_up(n, m):
    return ((n + m - 1) // m) * m


def mlp_forward(x, params, *, block_batch=512):
    """x: (B, input_size) float32. params: dict of w1,b1,w2,b2,w3,b3 (torch layout)."""
    B, in_dim = x.shape
    assert in_dim == input_size

    # Batch lives on the lane axis -> tile must be a multiple of 128.
    bb = max(128, min(_round_up(block_batch, 128), _round_up(B, 128)))
    Bp = _round_up(B, bb)

    x_t = x.T                                   # (input_size, B)
    if Bp != B:
        x_t = jnp.pad(x_t, ((0, 0), (0, Bp - B)))

    packed = pack_params(params)
    grid = (Bp // bb,)

    flops_per_row = 2 * (input_size * hidden_size1
                         + hidden_size1 * hidden_size2
                         + hidden_size2 * output_size)
    cost = pl.CostEstimate(
        flops=Bp * flops_per_row,
        transcendentals=Bp * (hidden_size1 + hidden_size2),
        bytes_accessed=4 * (Bp * (input_size + output_size) + PACK_ROWS * PACK_COLS),
    )

    in_specs = [
        # Packed params: same block every grid step -> one DMA, VMEM-resident.
        pl.BlockSpec((PACK_ROWS, PACK_COLS), lambda i: (0, 0)),
        # x tile: (input_size, bb), lane-dense over the batch.
        pl.BlockSpec((input_size, bb), lambda i: (0, i)),
    ]
    out_spec = pl.BlockSpec((output_size, bb), lambda i: (0, i))

    out_t = pl.pallas_call(
        mlp_kernel,
        out_shape=jax.ShapeDtypeStruct((output_size, Bp), x.dtype),
        grid=grid,
        in_specs=in_specs,
        out_specs=out_spec,
        compiler_params=pltpu.CompilerParams(
            dimension_semantics=("parallel",),   # megacore sharding on v7x
        ),
        cost_estimate=cost,
    )(packed, x_t)

    return out_t[:, :B].T                       # back to (B, output_size)


def init_params(key):
    """Deterministic init mimicking torch.nn.Linear default: U(-1/sqrt(fan_in), 1/sqrt(fan_in)).
    Weights in torch layout (out_features, in_features); biases (out_features, 1)."""
    ks = jax.random.split(key, 6)

    def linear(kw, kb, fan_in, fan_out):
        bound = 1.0 / (float(fan_in) ** 0.5)
        w = jax.random.uniform(kw, (fan_out, fan_in), jnp.float32, -bound, bound)
        b = jax.random.uniform(kb, (fan_out, 1), jnp.float32, -bound, bound)
        return w, b

    w1, b1 = linear(ks[0], ks[1], input_size, hidden_size1)
    w2, b2 = linear(ks[2], ks[3], hidden_size1, hidden_size2)
    w3, b3 = linear(ks[4], ks[5], hidden_size2, output_size)
    return {"w1": w1, "b1": b1, "w2": w2, "b2": b2, "w3": w3, "b3": b3}


def mlp_reference(x, p):
    h1 = jax.nn.sigmoid(x @ p["w1"].T + p["b1"].T)
    h2 = jax.nn.sigmoid(h1 @ p["w2"].T + p["b2"].T)
    return h2 @ p["w3"].T + p["b3"].T


if __name__ == "__main__":
    key = jax.random.PRNGKey(0)
    k_params, k_x, k_x2 = jax.random.split(key, 3)

    params = init_params(k_params)

    # Main case: enough rows that the grid has several steps (pipelining +
    # both v7x TensorCores), still a tiny amount of data.
    batch = 2048
    x = jax.random.normal(k_x, (batch, input_size), jnp.float32)
    out = mlp_forward(x, params, block_batch=512)
    jax.block_until_ready(out)
    ref = mlp_reference(x, params)
    assert out.shape == (batch, output_size)
    assert jnp.allclose(out, ref, atol=1e-5, rtol=1e-5)

    # Ragged / small batch (exercises the pad-to-128 path).
    batch2 = 100
    x2 = jax.random.normal(k_x2, (batch2, input_size), jnp.float32)
    out2 = mlp_forward(x2, params)
    jax.block_until_ready(out2)
    ref2 = mlp_reference(x2, params)
    assert out2.shape == (batch2, output_size)
    assert jnp.allclose(out2, ref2, atol=1e-5, rtol=1e-5)

    print("KERNEL_OK")
</pallas_src>

<mosaic_0001>
module attributes {stable_mosaic.version = 11 : i64} {
  func.func @mlp_kernel(%arg0: i32, %arg1: memref<8x128xf32, #tpu.memory_space<vmem>>, %arg2: memref<2x512xf32, #tpu.memory_space<vmem>>, %arg3: memref<1x512xf32, #tpu.memory_space<vmem>>) attributes {dimension_semantics = [#tpu.dimension_semantics<parallel>], iteration_bounds = array<i64: 4>, scalar_prefetch = 0 : i64, scratch_operands = 0 : i64, tpu.core_type = #tpu.core_type<tc>, window_params = [{pipeline_mode = #tpu.pipeline_mode<synchronous>, transform_indices = @transform_0, window_bounds = array<i64: 8, 128>}, {transform_indices = @transform_1, window_bounds = array<i64: 2, 512>}, {transform_indices = @transform_2, window_bounds = array<i64: 1, 512>}]} {
    %c0 = arith.constant 0 : index
    %c0_0 = arith.constant 0 : index
    %0 = vector.load %arg1[%c0, %c0_0] : memref<8x128xf32, #tpu.memory_space<vmem>>, vector<8x128xf32>
    %c0_1 = arith.constant 0 : index
    %c0_2 = arith.constant 0 : index
    %1 = vector.load %arg2[%c0_1, %c0_2] : memref<2x512xf32, #tpu.memory_space<vmem>>, vector<2x512xf32>
    %2 = vector.extract_strided_slice %0 {offsets = [0, 0], sizes = [5, 2], strides = [1, 1]} : vector<8x128xf32> to vector<5x2xf32>
    %3 = vector.extract_strided_slice %0 {offsets = [0, 2], sizes = [5, 1], strides = [1, 1]} : vector<8x128xf32> to vector<5x1xf32>
    %4 = vector.extract_strided_slice %0 {offsets = [0, 3], sizes = [5, 5], strides = [1, 1]} : vector<8x128xf32> to vector<5x5xf32>
    %5 = vector.extract_strided_slice %0 {offsets = [0, 8], sizes = [5, 1], strides = [1, 1]} : vector<8x128xf32> to vector<5x1xf32>
    %6 = vector.extract_strided_slice %0 {offsets = [0, 9], sizes = [1, 5], strides = [1, 1]} : vector<8x128xf32> to vector<1x5xf32>
    %7 = vector.extract_strided_slice %0 {offsets = [0, 14], sizes = [1, 1], strides = [1, 1]} : vector<8x128xf32> to vector<1x1xf32>
    %8 = vector.shape_cast %3 : vector<5x1xf32> to vector<5x1xf32>
    %9 = vector.broadcast %8 : vector<5x1xf32> to vector<5x512xf32>
    %10 = vector.extract_strided_slice %2 {offsets = [0, 0], sizes = [5, 1], strides = [1, 1]} : vector<5x2xf32> to vector<5x1xf32>
    %11 = vector.extract_strided_slice %1 {offsets = [0, 0], sizes = [1, 512], strides = [1, 1]} : vector<2x512xf32> to vector<1x512xf32>
    %12 = vector.broadcast %10 : vector<5x1xf32> to vector<5x512xf32>
    %13 = vector.broadcast %11 : vector<1x512xf32> to vector<5x512xf32>
    %14 = arith.mulf %12, %13 : vector<5x512xf32>
    %15 = arith.addf %9, %14 : vector<5x512xf32>
    %16 = vector.extract_strided_slice %2 {offsets = [0, 1], sizes = [5, 1], strides = [1, 1]} : vector<5x2xf32> to vector<5x1xf32>
    %17 = vector.extract_strided_slice %1 {offsets = [1, 0], sizes = [1, 512], strides = [1, 1]} : vector<2x512xf32> to vector<1x512xf32>
    %18 = vector.broadcast %16 : vector<5x1xf32> to vector<5x512xf32>
    %19 = vector.broadcast %17 : vector<1x512xf32> to vector<5x512xf32>
    %20 = arith.mulf %18, %19 : vector<5x512xf32>
    %21 = arith.addf %15, %20 : vector<5x512xf32>
    %22 = arith.negf %21 : vector<5x512xf32>
    %23 = math.exp %22 : vector<5x512xf32>
    %cst = arith.constant 1.000000e+00 : f32
    %24 = vector.broadcast %cst : f32 to vector<5x512xf32>
    %25 = arith.addf %24, %23 : vector<5x512xf32>
    %26 = arith.divf %24, %25 : vector<5x512xf32>
    %27 = vector.shape_cast %5 : vector<5x1xf32> to vector<5x1xf32>
    %28 = vector.broadcast %27 : vector<5x1xf32> to vector<5x512xf32>
    %29 = vector.extract_strided_slice %4 {offsets = [0, 0], sizes = [5, 1], strides = [1, 1]} : vector<5x5xf32> to vector<5x1xf32>
    %30 = vector.extract_strided_slice %26 {offsets = [0, 0], sizes = [1, 512], strides = [1, 1]} : vector<5x512xf32> to vector<1x512xf32>
    %31 = vector.broadcast %29 : vector<5x1xf32> to vector<5x512xf32>
    %32 = vector.broadcast %30 : vector<1x512xf32> to vector<5x512xf32>
    %33 = arith.mulf %31, %32 : vector<5x512xf32>
    %34 = arith.addf %28, %33 : vector<5x512xf32>
    %35 = vector.extract_strided_slice %4 {offsets = [0, 1], sizes = [5, 1], strides = [1, 1]} : vector<5x5xf32> to vector<5x1xf32>
    %36 = vector.extract_strided_slice %26 {offsets = [1, 0], sizes = [1, 512], strides = [1, 1]} : vector<5x512xf32> to vector<1x512xf32>
    %37 = vector.broadcast %35 : vector<5x1xf32> to vector<5x512xf32>
    %38 = vector.broadcast %36 : vector<1x512xf32> to vector<5x512xf32>
    %39 = arith.mulf %37, %38 : vector<5x512xf32>
    %40 = arith.addf %34, %39 : vector<5x512xf32>
    %41 = vector.extract_strided_slice %4 {offsets = [0, 2], sizes = [5, 1], strides = [1, 1]} : vector<5x5xf32> to vector<5x1xf32>
    %42 = vector.extract_strided_slice %26 {offsets = [2, 0], sizes = [1, 512], strides = [1, 1]} : vector<5x512xf32> to vector<1x512xf32>
    %43 = vector.broadcast %41 : vector<5x1xf32> to vector<5x512xf32>
    %44 = vector.broadcast %42 : vector<1x512xf32> to vector<5x512xf32>
    %45 = arith.mulf %43, %44 : vector<5x512xf32>
    %46 = arith.addf %40, %45 : vector<5x512xf32>
    %47 = vector.extract_strided_slice %4 {offsets = [0, 3], sizes = [5, 1], strides = [1, 1]} : vector<5x5xf32> to vector<5x1xf32>
    %48 = vector.extract_strided_slice %26 {offsets = [3, 0], sizes = [1, 512], strides = [1, 1]} : vector<5x512xf32> to vector<1x512xf32>
    %49 = vector.broadcast %47 : vector<5x1xf32> to vector<5x512xf32>
    %50 = vector.broadcast %48 : vector<1x512xf32> to vector<5x512xf32>
    %51 = arith.mulf %49, %50 : vector<5x512xf32>
    %52 = arith.addf %46, %51 : vector<5x512xf32>
    %53 = vector.extract_strided_slice %4 {offsets = [0, 4], sizes = [5, 1], strides = [1, 1]} : vector<5x5xf32> to vector<5x1xf32>
    %54 = vector.extract_strided_slice %26 {offsets = [4, 0], sizes = [1, 512], strides = [1, 1]} : vector<5x512xf32> to vector<1x512xf32>
    %55 = vector.broadcast %53 : vector<5x1xf32> to vector<5x512xf32>
    %56 = vector.broadcast %54 : vector<1x512xf32> to vector<5x512xf32>
    %57 = arith.mulf %55, %56 : vector<5x512xf32>
    %58 = arith.addf %52, %57 : vector<5x512xf32>
    %59 = arith.negf %58 : vector<5x512xf32>
    %60 = math.exp %59 : vector<5x512xf32>
    %cst_3 = arith.constant 1.000000e+00 : f32
    %61 = vector.broadcast %cst_3 : f32 to vector<5x512xf32>
    %62 = arith.addf %61, %60 : vector<5x512xf32>
    %63 = arith.divf %61, %62 : vector<5x512xf32>
    %64 = vector.shape_cast %7 : vector<1x1xf32> to vector<1x1xf32>
    %65 = vector.broadcast %64 : vector<1x1xf32> to vector<1x512xf32>
    %66 = vector.extract_strided_slice %6 {offsets = [0, 0], sizes = [1, 1], strides = [1, 1]} : vector<1x5xf32> to vector<1x1xf32>
    %67 = vector.extract_strided_slice %63 {offsets = [0, 0], sizes = [1, 512], strides = [1, 1]} : vector<5x512xf32> to vector<1x512xf32>
    %68 = vector.broadcast %66 : vector<1x1xf32> to vector<1x512xf32>
    %69 = arith.mulf %68, %67 : vector<1x512xf32>
    %70 = arith.addf %65, %69 : vector<1x512xf32>
    %71 = vector.extract_strided_slice %6 {offsets = [0, 1], sizes = [1, 1], strides = [1, 1]} : vector<1x5xf32> to vector<1x1xf32>
    %72 = vector.extract_strided_slice %63 {offsets = [1, 0], sizes = [1, 512], strides = [1, 1]} : vector<5x512xf32> to vector<1x512xf32>
    %73 = vector.broadcast %71 : vector<1x1xf32> to vector<1x512xf32>
    %74 = arith.mulf %73, %72 : vector<1x512xf32>
    %75 = arith.addf %70, %74 : vector<1x512xf32>
    %76 = vector.extract_strided_slice %6 {offsets = [0, 2], sizes = [1, 1], strides = [1, 1]} : vector<1x5xf32> to vector<1x1xf32>
    %77 = vector.extract_strided_slice %63 {offsets = [2, 0], sizes = [1, 512], strides = [1, 1]} : vector<5x512xf32> to vector<1x512xf32>
    %78 = vector.broadcast %76 : vector<1x1xf32> to vector<1x512xf32>
    %79 = arith.mulf %78, %77 : vector<1x512xf32>
    %80 = arith.addf %75, %79 : vector<1x512xf32>
    %81 = vector.extract_strided_slice %6 {offsets = [0, 3], sizes = [1, 1], strides = [1, 1]} : vector<1x5xf32> to vector<1x1xf32>
    %82 = vector.extract_strided_slice %63 {offsets = [3, 0], sizes = [1, 512], strides = [1, 1]} : vector<5x512xf32> to vector<1x512xf32>
    %83 = vector.broadcast %81 : vector<1x1xf32> to vector<1x512xf32>
    %84 = arith.mulf %83, %82 : vector<1x512xf32>
    %85 = arith.addf %80, %84 : vector<1x512xf32>
    %86 = vector.extract_strided_slice %6 {offsets = [0, 4], sizes = [1, 1], strides = [1, 1]} : vector<1x5xf32> to vector<1x1xf32>
    %87 = vector.extract_strided_slice %63 {offsets = [4, 0], sizes = [1, 512], strides = [1, 1]} : vector<5x512xf32> to vector<1x512xf32>
    %88 = vector.broadcast %86 : vector<1x1xf32> to vector<1x512xf32>
    %89 = arith.mulf %88, %87 : vector<1x512xf32>
    %90 = arith.addf %85, %89 : vector<1x512xf32>
    %c0_4 = arith.constant 0 : index
    %c0_5 = arith.constant 0 : index
    %91 = vector.load %arg3[%c0_4, %c0_5] : memref<1x512xf32, #tpu.memory_space<vmem>>, vector<1x512xf32>
    tpu.vector_store %arg3[%c0_4, %c0_5], %90 {strides = array<i32>} : memref<1x512xf32, #tpu.memory_space<vmem>>, vector<1x512xf32>,
    return
  }
  func.func @transform_0(%arg0: i32) -> (i32, i32) {
    %c0_i32 = arith.constant 0 : i32
    %c0_i32_0 = arith.constant 0 : i32
    %c0_i32_1 = arith.constant 0 : i32
    return %c0_i32, %c0_i32_0 : i32, i32
  }
  func.func @transform_1(%arg0: i32) -> (i32, i32) {
    %c0_i32 = arith.constant 0 : i32
    %c0_i32_0 = arith.constant 0 : i32
    return %c0_i32, %arg0 : i32, i32
  }
  func.func @transform_2(%arg0: i32) -> (i32, i32) {
    %c0_i32 = arith.constant 0 : i32
    %c0_i32_0 = arith.constant 0 : i32
    return %c0_i32, %arg0 : i32, i32
  }
}

</mosaic_0001>

<bundles_post_ra>
// kernel: tpu_custom_call.1
= control target key start
LH: loop header
LB: loop body
LE: loop exit
PB: predicated region body
PF: predicated region fallthrough
CT: control target
= control target key end

     0   :  { %7 = vsyncpa [#allocation3], 0  ;;  %s1233_s0 = inlined_call_operand.hbm [shape: f32[8,128], index: 0, kind: input, shape index: {}]   ;;  %s1234_s1 = inlined_call_operand.hbm [shape: f32[2,2048], index: 1, kind: input, shape index: {}]   ;;  %s1235_s2 = inlined_call_operand.hbm [shape: f32[1,2048], index: 2, kind: output, shape index: {}]  }
   0x1   :  { %8 = vsyncpa [#allocation6], 0 }
   0x2   :  { %10 = vsyncpa [#allocation6 + $0x1], 0 }
   0x3   :  { %11 = vsyncpa [#allocation4], 0 }
   0x4   :  { %13 = vsyncpa [#allocation4 + $0x1], 0  ;;  %s1006_s9 = smov 0   ;;  %s1008_s10 = smov 0  }
   0x5   :  { %s1010_s11 = smov 0   ;;  %s1012_s12 = smov 0  }
   0x6 LB: > { %s1027_s13 = sadd.s32 4294967295, %s970_s12   ;;  %s702_s14 = sadd.s32 4294967294, %s970_s12   ;;  %s970_s12 = sphi %s1012_s12, %s1257_s12   ;;  %s966_s11 = sphi %s1010_s11, %s1256_s11   ;;  %s962_s10 = sphi %s1008_s10, %s1255_s10   ;;  %s958_s9 = sphi %s1006_s9, %s1254_s9  }
   0x7   : > { %p60_p0 = scmp.ne.s32.totalorder %s962_s10, %s958_s9  ;;  %p1236_p1 = scmp.eq.s32.totalorder %s1027_s13, 0 }
   0x8   : > { %p90_p3 = scmp.eq.s32.totalorder %s702_s14, 3  ;;  %p703_p5 = scmp.ge.s32.totalorder %s970_s12, 1 }
   0x9   : > { %p1036_p4 = por %p1236_p1, %p60_p0  ;;  %p97_p7 = scmp.lt.s32.totalorder %s970_s12, 5 }
   0xa   : > { %p1041_p6 = por %p90_p3, %p60_p0  ;;  %s972_s18 = smov [#allocation2]  }
   0xb   : > { %s1240_s15 = scalar_select %p1036_p4, 1, 0 }
   0xc   : > { %s1241_s16 = scalar_select %p1041_p6, 1, 0 }
   0xd   : > { %p1046_p8 = pnand %p703_p5, %p97_p7  ;;  %s110_s19 = sshll.u32 %s972_s18, 4  ;;  %s111_s19 = int_to_ptr.vmem [resolvable:$true] %s110_s19 }
   0xe   : > { %s1053_s20 = sadd.s32 1, %s970_s12   ;;  %s47_s24 = sadd.s32 1, %s966_s11 }
   0xf   : > { %s1242_s17 = scalar_select %p1046_p8, 1, 0 }
  0x10   : > { %p736_p9 = pneg %p1046_p8  ;;  %s44_s22 = ssub.s32 %s970_s12, %s1053_s20 }
  0x11   : > { %p1063_p11 = scmp.eq.s32.totalorder %s44_s22, 0  ;;  %p54_p12 = scmp.ne.s32.totalorder %s966_s11, %s962_s10 }
  0x12   : > { %p1057_p10 = pnand %p736_p9, %p1236_p1  ;;  %s859_s25 = scalar_lea.vmem %s111_s19, 128 }
  0x13   : > { %p860_p0 = scmp.ne.s32.totalorder %s111_s19, %s859_s25  ;;  %p867_p7 = scmp.lt.s32.totalorder %s111_s19, %s111_s19 }
  0x14   : > { %p850_p13 = pneg %p1057_p10  ;;  %p868_p2 = scmp.lt.s32.totalorder %s859_s25, %s859_s25 }
  0x16   : > { %p862_p3 = pnand %p860_p0, %p850_p13  ;;  %p869_p9 = por %p868_p2, %p867_p7 }
  0x18   : > { %p863_p5 = pneg %p862_p3 }
  0x1a   : > { %p870_p1 = pnand %p869_p9, %p863_p5 }
  0x1c   : > { %873 = shalt.err (!%p870_p1)
}
  0x1d   : > { %739 = dma.hbm_to_vmem [thread:$0]  (!%p1057_p10), %s1233_s0, 128, %s111_s19, [#allocation3]  }
  0x1e   : > { %s1080_s28 = scalar_select %p1063_p11, %s966_s11, %s47_s24  }
  0x1f   : > { %p55_p1 = scmp.eq.s32.totalorder %s970_s12, 0  ;;  %p1245_p2 = scmp.eq.s32.totalorder %s1027_s13, 3 }
  0x20   : > { %p749_p0 = scmp.lt.s32.totalorder %s970_s12, 4  ;;  %s121_s30 = sand.u32 1, %s966_s11  }
  0x21   : > { %p1088_p13 = por %p1245_p2, %p54_p12  ;;  %p56_p3 = por %p55_p1, %p54_p12 }
  0x22   : > { %s706_s3 = sshll.u32 %s121_s30, 3  ;;  %s726_s4 = sshll.u32 %s970_s12, 7 }
  0x23   : > { %s1246_s29 = scalar_select %p1088_p13, 1, 0 }
  0x24   : > { %s1101_s7 = scalar_lea.hbm %s1234_s1, %s726_s4  ;;  %s125_s8 = scalar_lea.vmem [#allocation5], %s706_s3 }
  0x25   : > { %s133_s14 = sshll.u32 %s125_s8, 4  ;;  %p1103_p10 = pnand %p749_p0, %p56_p3  ;;  %s134_s14 = int_to_ptr.vmem [resolvable:$true] %s133_s14 }
  0x26   : > { %s122_s19 = scalar_lea.sflag [#allocation6], %s121_s30  ;;  %s874_s21 = scalar_lea.hbm %s1101_s7, 128 }
  0x27   : > { %p875_p11 = scmp.ne.s32.totalorder %s1101_s7, %s874_s21  ;;  %p876_p12 = pneg %p1103_p10 }
  0x28   : > { %s879_s24 = scalar_lea.hbm %s1234_s1, 512  ;;  %p880_p9 = scmp.lt.s32.totalorder %s1101_s7, %s1234_s1 }
  0x29   : > { %p877_p5 = pnand %p876_p12, %p875_p11  ;;  %p881_p1 = scmp.lt.s32.totalorder %s879_s24, %s874_s21 }
  0x2b   : > { %p878_p7 = pneg %p877_p5  ;;  %p882_p2 = por %p881_p1, %p880_p9 }
  0x2d   : > { %p883_p0 = pnand %p882_p2, %p878_p7 }
  0x2f   : > { %886 = shalt.err (!%p883_p0)
}
  0x30   : > { %s887_s27 = scalar_lea.vmem %s134_s14, 128  ;;  %s973_s30 = smov [#allocation5]  }
  0x31   : > { %p888_p3 = scmp.ne.s32.totalorder %s134_s14, %s887_s27  ;;  %s892_s3 = sshll.u32 %s973_s30, 4  ;;  %s893_s3 = int_to_ptr.vmem [resolvable:$false] %s892_s3 }
  0x32   : > { %s894_s4 = scalar_lea.vmem %s893_s3, 256  ;;  %p895_p11 = scmp.lt.s32.totalorder %s134_s14, %s893_s3 }
  0x33   : > { %p890_p6 = pnand %p888_p3, %p876_p12  ;;  %p896_p5 = scmp.lt.s32.totalorder %s894_s4, %s887_s27 }
  0x35   : > { %p891_p13 = pneg %p890_p6  ;;  %p897_p4 = por %p896_p5, %p895_p11 }
  0x37   : > { %p898_p8 = pnand %p897_p4, %p891_p13 }
  0x39   : > { %901 = shalt.err (!%p898_p8)
}
  0x3a   : > { %743 = dma.hbm_to_vmem [thread:$0]  (!%p1103_p10), %s1101_s7, 128, %s134_s14, %s122_s19  }
  0x3b   : > { %p1248_p7 = scmp.ne.s32.totalorder %s1242_s17, 0 }
  0x3c   : > { %p1249_p9 = scmp.eq.s32.totalorder (!%p1248_p7), %s1027_s13, 0 }
  0x3d   : > { %142 = sbr.rel (%p1248_p7) target bundleno = 323 (0x143), region = 28 }
  0x42   : > { %945 = dma.done.wait (%p1249_p9), [#allocation3], 128   ;;  %p1250_p6 = pmov %p1249_p9 }
  0x43   : > { %s1128_s5 = sand.u32 1, %s962_s10   ;;  %p1251_p4 = scmp.ne.s32.totalorder %s1240_s15, 0 }
  0x44   : > { %947 = vsyncadd (%p1250_p6), [#allocation3], 4294967168  ;;  %s711_s6 = sshll.u32 %s1128_s5, 3  ;;  %s149_s8 = scalar_lea.sflag [#allocation6], %s1128_s5 }
  0x45   : > { %s1132_s18 = scalar_lea.vmem [#allocation5], %s711_s6 }
  0x46   : > { %949 = dma.done.wait (%p1251_p4), %s149_s8, 128  }
  0x47   : > { %951 = vsyncadd (%p1251_p4), %s149_s8, 4294967168  ;;  %v974_v0 = vmov 0   ;;  %v975_v1 = vmov 1   ;;  %v175_v2 = vld [vmem:[#allocation2] sm:$0xff]  ;;  %v976_v3 = vmov 2   ;;  %v977_v4 = vmov 3  }
  0x48   : > { %801 = vset.pattern.permute.xlu0 %v974_v0  ;;  %803 = vset.pattern.permute.xlu1 %v975_v1  ;;  %v978_v5 = vmov 8   ;;  %v979_v6 = vmov 4   ;;  %v980_v7 = vmov 5   ;;  %v981_v8 = vmov 7   ;;  %v176_v22 = vld [vmem:[%s1132_s18] sm:$0xff]  ;;  %s712_s15 = sshll.u32 %s1128_s5, 2 }
  0x49   : > { %183 = vperm.xlu0 %801, %v175_v2   ;;  %232 = vperm.xlu1 %803, %v175_v2   ;;  %v982_v9 = vmov 6   ;;  %v983_v10 = vmov 10   ;;  %v984_v11 = vmov 9   ;;  %v985_v12 = vmov 13   ;;  %s727_s17 = sshll.u32 %s1027_s13, 6  ;;  %s172_s7 = scalar_lea.vmem [#allocation7], %s712_s15 }
  0x4a   : > { %v986_v13 = vmov 14   ;;  %v987_v14 = vmov 11   ;;  %v988_v15 = vmov 12   ;;  %v187_v16 = vlaneseq  ;;  %s620_s14 = sshll.u32 %s172_s7, 4  ;;  %s618_s22 = scalar_lea.hbm %s1235_s2, %s727_s17  ;;  %s621_s14 = int_to_ptr.vmem [resolvable:$true] %s620_s14 }
  0x4b   : > { %s606_s23 = scalar_lea.sflag [#allocation4], %s1128_s5  ;;  %s902_s24 = scalar_lea.vmem %s621_s14, 64 }
  0x4c   : > { %v1139_v17 = vshrl.u32 %v187_v16, 7  ;;  %vm602_vm0 = vcmp.lt.s32.totalorder %v187_v16, 512  ;;  %p903_p8 = scmp.ne.s32.totalorder %s621_s14, %s902_s24  ;;  %p1252_p13 = scmp.ne.s32.totalorder %s1246_s29, 0 }
  0x4d   : > { %802 = vset.pattern.permute.xlu0 %v976_v3  ;;  %804 = vset.pattern.permute.xlu1 %v977_v4  ;;  %s990_s25 = smov [#allocation7]  }
  0x4e   : > { %179 = vperm.xlu0 %802, %v175_v2   ;;  %308 = vperm.xlu1 %804, %v175_v2   ;;  %v1142_v18 = vsub.s32 0, %v1139_v17  ;;  %v1145_v19 = vsub.s32 2, %v1139_v17  ;;  %v1148_v20 = vsub.s32 4, %v1139_v17  ;;  %v201_v21 = vsub.s32 6, %v1139_v17  ;;  %p904_p10 = pnand %p903_p8, %p1252_p13  ;;  %s906_s13 = sshll.u32 %s990_s25, 4  ;;  %s907_s13 = int_to_ptr.vmem [resolvable:$false] %s906_s13 }
  0x4f   : > { %v1153_v23 = vsub.s32 1, %v1139_v17  ;;  %v1156_v24 = vsub.s32 3, %v1139_v17  ;;  %v245_v25 = vsub.s32 5, %v1139_v17  ;;  %v249_v26 = vsub.s32 7, %v1139_v17  ;;  %s908_s26 = scalar_lea.vmem %s907_s13, 128  ;;  %p909_p1 = scmp.lt.s32.totalorder %s621_s14, %s907_s13 }
  0x50   : > { %v190_v27 = vrot.slane %v176_v22, %v1142_v18  ;;  %v194_v28 = vrot.slane %v176_v22, %v1145_v19  ;;  %v198_v29 = vrot.slane %v176_v22, %v1148_v20  ;;  %v202_v30 = vrot.slane %v176_v22, %v201_v21  ;;  %p905_p12 = pneg %p904_p10  ;;  %p910_p2 = scmp.lt.s32.totalorder %s908_s26, %s902_s24 }
  0x51   : > { %v238_v31 = vrot.slane %v176_v22, %v1153_v23  ;;  %v242_v32 = vrot.slane %v176_v22, %v1156_v24  ;;  %v246_v33 = vrot.slane %v176_v22, %v245_v25  ;;  %v250_v34 = vrot.slane %v176_v22, %v249_v26 }
  0x52   : > { %805 = vset.pattern.permute.xlu1 %v978_v5  ;;  %806 = vset.pattern.permute.xlu0 %v979_v6  ;;  %v210_v35 = vrot.slane %v190_v27, %v1142_v18  ;;  %v214_v36 = vrot.slane %v194_v28, %v1142_v18  ;;  %v218_v37 = vrot.slane %v198_v29, %v1142_v18  ;;  %p911_p0 = por %p910_p2, %p909_p1 }
  0x53   : > { %304 = vperm.xlu1 %805, %v175_v2   ;;  %336 = vperm.xlu0 %806, %v175_v2   ;;  %v222_v38 = vrot.slane %v202_v30, %v1142_v18  ;;  %v258_v40 = vrot.slane %v238_v31, %v1153_v23  ;;  %v262_v41 = vrot.slane %v242_v32, %v1153_v23 }
  0x54   : > { %v266_v42 = vrot.slane %v246_v33, %v1153_v23  ;;  %v270_v43 = vrot.slane %v250_v34, %v1153_v23  ;;  %p912_p3 = pnand %p911_p0, %p905_p12 }
  0x57   : > { %807 = vset.pattern.permute.xlu1 %v980_v7  ;;  %809 = vset.pattern.permute.xlu0 %v981_v8 }
  0x58   : > { %364 = vperm.xlu1 %807, %v175_v2   ;;  %420 = vperm.xlu0 %809, %v175_v2  }
  0x5c   : > { %808 = vset.pattern.permute.xlu1 %v982_v9  ;;  %812 = vset.pattern.permute.xlu0 %v983_v10 }
  0x5d   : > { %392 = vperm.xlu1 %808, %v175_v2   ;;  %488 = vperm.xlu0 %812, %v175_v2  }
  0x61   : > { %810 = vset.pattern.permute.xlu1 %v984_v11  ;;  %815 = vset.pattern.permute.xlu0 %v985_v12 }
  0x62   : > { %476 = vperm.xlu1 %810, %v175_v2   ;;  %552 = vperm.xlu0 %815, %v175_v2  }
  0x66   : > { %811 = vset.pattern.permute.xlu1 %v986_v13 }
  0x67   : > { %472 = vperm.xlu1 %811, %v175_v2  }
  0x6b   : > { %813 = vset.pattern.permute.xlu1 %v987_v14 }
  0x6c   : > { %512 = vperm.xlu1 %813, %v175_v2  }
  0x70   : > { %814 = vset.pattern.permute.xlu1 %v988_v15 }
  0x71   : > { %532 = vperm.xlu1 %814, %v175_v2  }
  0xc4   : > { %v184_v39 = vpop.permute.xlu0 %183  ;;  %v233_v44 = vpop.permute.xlu1 %232 }
  0xc5   : > { %v223_v45 = vmul.f32 %v210_v35, %v184_v39  ;;  %v224_v46 = vmul.f32 %v214_v36, %v184_v39  ;;  %v225_v47 = vmul.f32 %v218_v37, %v184_v39  ;;  %v226_v48 = vmul.f32 %v222_v38, %v184_v39 }
  0xc6   : > { %v271_v49 = vmul.f32 %v258_v40, %v233_v44  ;;  %v272_v50 = vmul.f32 %v262_v41, %v233_v44  ;;  %v273_v51 = vmul.f32 %v266_v42, %v233_v44  ;;  %v274_v52 = vmul.f32 %v270_v43, %v233_v44 }
  0xc9   : > { %v180_v53 = vpop.permute.xlu0 %179  ;;  %v309_v10 = vpop.permute.xlu1 %308 }
  0xca   : > { %v227_v54 = vadd.f32 %v223_v45, %v180_v53  ;;  %v228_v55 = vadd.f32 %v224_v46, %v180_v53  ;;  %v229_v56 = vadd.f32 %v225_v47, %v180_v53  ;;  %v230_v57 = vadd.f32 %v226_v48, %v180_v53 }
  0xcc   : > { %v275_v58 = vadd.f32 %v271_v49, %v227_v54  ;;  %v276_v59 = vadd.f32 %v272_v50, %v228_v55  ;;  %v277_v60 = vadd.f32 %v273_v51, %v229_v56  ;;  %v278_v61 = vadd.f32 %v274_v52, %v230_v57 }
  0xce   : > { %v713_v62 = vmul.f32 -1.442695, %v275_v58  ;;  %v714_v63 = vmul.f32 -1.442695, %v276_v59  ;;  %v715_v0 = vmul.f32 -1.442695, %v277_v60  ;;  %v305_v11 = vpop.permute.xlu1 %304  ;;  %v337_v40 = vpop.permute.xlu0 %336 }
  0xcf   : > { %v716_v1 = vmul.f32 -1.442695, %v278_v61 }
  0xd0   : > { %816 = vpow2.f32 %v713_v62 }
  0xd1   : > { %818 = vpow2.f32 %v714_v63 }
  0xd2   : > { %820 = vpow2.f32 %v715_v0 }
  0xd3   : > { %822 = vpow2.f32 %v716_v1  ;;  %v365_v13 = vpop.permute.xlu1 %364 }
  0xd8   : > { %v393_v49 = vpop.permute.xlu1 %392 }
  0xdd   : > { %v817_v2 = vpop.eup %816 }
  0xde   : > { %v819_v3 = vpop.eup %818  ;;  %v291_v4 = vadd.f32 1.0, %v817_v2 }
  0xdf   : > { %v821_v5 = vpop.eup %820  ;;  %v292_v6 = vadd.f32 1.0, %v819_v3 }
  0xe0   : > { %v823_v7 = vpop.eup %822  ;;  %v293_v8 = vadd.f32 1.0, %v821_v5  ;;  %824 = vrcp.f32 %v291_v4 }
  0xe1   : > { %v294_v9 = vadd.f32 1.0, %v823_v7  ;;  %826 = vrcp.f32 %v292_v6 }
  0xe2   : > { %828 = vrcp.f32 %v293_v8 }
  0xe3   : > { %830 = vrcp.f32 %v294_v9 }
  0xed   : > { %v825_v12 = vpop.eup %824 }
  0xee   : > { %v827_v14 = vpop.eup %826  ;;  %v314_v15 = vrot.slane %v825_v12, %v1142_v18  ;;  %v370_v21 = vrot.slane %v825_v12, %v1145_v19  ;;  %v342_v22 = vrot.slane %v825_v12, %v1153_v23  ;;  %v398_v25 = vrot.slane %v825_v12, %v1156_v24 }
  0xef   : > { %v829_v26 = vpop.eup %828  ;;  %v318_v27 = vrot.slane %v827_v14, %v1142_v18  ;;  %v374_v28 = vrot.slane %v827_v14, %v1145_v19  ;;  %v346_v29 = vrot.slane %v827_v14, %v1153_v23  ;;  %v402_v30 = vrot.slane %v827_v14, %v1156_v24 }
  0xf0   : > { %v831_v31 = vpop.eup %830  ;;  %v322_v32 = vrot.slane %v829_v26, %v1142_v18  ;;  %v327_v33 = vmul.f32 %v314_v15, %v309_v10  ;;  %v378_v34 = vrot.slane %v829_v26, %v1145_v19  ;;  %v383_v35 = vmul.f32 %v370_v21, %v365_v13 }
  0xf1   : > { %v326_v36 = vrot.slane %v831_v31, %v1142_v18  ;;  %v328_v37 = vmul.f32 %v318_v27, %v309_v10  ;;  %v382_v38 = vrot.slane %v831_v31, %v1145_v19  ;;  %v384_v39 = vmul.f32 %v374_v28, %v365_v13 }
  0xf2   : > { %v329_v41 = vmul.f32 %v322_v32, %v309_v10  ;;  %v331_v42 = vadd.f32 %v327_v33, %v305_v11  ;;  %v385_v43 = vmul.f32 %v378_v34, %v365_v13  ;;  %v350_v44 = vrot.slane %v829_v26, %v1153_v23 }
  0xf3   : > { %v330_v45 = vmul.f32 %v326_v36, %v309_v10  ;;  %v332_v46 = vadd.f32 %v328_v37, %v305_v11  ;;  %v386_v47 = vmul.f32 %v382_v38, %v365_v13  ;;  %v354_v48 = vrot.slane %v831_v31, %v1153_v23  ;;  %v421_v23 = vpop.permute.xlu0 %420  ;;  %v477_v36 = vpop.permute.xlu1 %476 }
  0xf4   : > { %v333_v50 = vadd.f32 %v329_v41, %v305_v11  ;;  %v355_v51 = vmul.f32 %v342_v22, %v337_v40  ;;  %v356_v52 = vmul.f32 %v346_v29, %v337_v40  ;;  %v357_v18 = vmul.f32 %v350_v44, %v337_v40 }
  0xf5   : > { %v334_v53 = vadd.f32 %v330_v45, %v305_v11  ;;  %v358_v54 = vmul.f32 %v354_v48, %v337_v40  ;;  %v406_v19 = vrot.slane %v829_v26, %v1156_v24  ;;  %v410_v55 = vrot.slane %v831_v31, %v1156_v24 }
  0xf6   : > { %v359_v56 = vadd.f32 %v355_v51, %v331_v42  ;;  %v360_v57 = vadd.f32 %v356_v52, %v332_v46  ;;  %v361_v58 = vadd.f32 %v357_v18, %v333_v50  ;;  %v411_v59 = vmul.f32 %v398_v25, %v393_v49 }
  0xf7   : > { %v362_v60 = vadd.f32 %v358_v54, %v334_v53  ;;  %v412_v61 = vmul.f32 %v402_v30, %v393_v49  ;;  %v413_v62 = vmul.f32 %v406_v19, %v393_v49  ;;  %v414_v63 = vmul.f32 %v410_v55, %v393_v49  ;;  %v473_v38 = vpop.permute.xlu1 %472 }
  0xf8   : > { %v387_v0 = vadd.f32 %v383_v35, %v359_v56  ;;  %v388_v1 = vadd.f32 %v384_v39, %v360_v57  ;;  %v389_v2 = vadd.f32 %v385_v43, %v361_v58  ;;  %v426_v3 = vrot.slane %v825_v12, %v1148_v20  ;;  %v489_v57 = vpop.permute.xlu0 %488 }
  0xf9   : > { %v390_v4 = vadd.f32 %v386_v47, %v362_v60  ;;  %v430_v5 = vrot.slane %v827_v14, %v1148_v20  ;;  %v434_v6 = vrot.slane %v829_v26, %v1148_v20  ;;  %v438_v24 = vrot.slane %v831_v31, %v1148_v20 }
  0xfa   : > { %v415_v7 = vadd.f32 %v411_v59, %v387_v0  ;;  %v416_v8 = vadd.f32 %v412_v61, %v388_v1  ;;  %v417_v9 = vadd.f32 %v413_v62, %v389_v2  ;;  %v439_v10 = vmul.f32 %v426_v3, %v421_v23 }
  0xfb   : > { %v418_v11 = vadd.f32 %v414_v63, %v390_v4  ;;  %v440_v13 = vmul.f32 %v430_v5, %v421_v23  ;;  %v441_v15 = vmul.f32 %v434_v6, %v421_v23  ;;  %v442_v21 = vmul.f32 %v438_v24, %v421_v23  ;;  %v513_v41 = vpop.permute.xlu1 %512 }
  0xfc   : > { %v443_v22 = vadd.f32 %v439_v10, %v415_v7  ;;  %v989_v39 = vmov 1966171168  }
  0xfd   : > { %v444_v25 = vadd.f32 %v440_v13, %v416_v8  ;;  %v445_v27 = vadd.f32 %v441_v15, %v417_v9  ;;  %v446_v28 = vadd.f32 %v442_v21, %v418_v11  ;;  %v1193_v40 = vunpack.c.l.s4 %v989_v39 }
  0xfe   : > { %v717_v12 = vmul.f32 -1.442695, %v443_v22 }
  0xff   : > { %v718_v29 = vmul.f32 -1.442695, %v444_v25  ;;  %v719_v30 = vmul.f32 -1.442695, %v445_v27  ;;  %v720_v14 = vmul.f32 -1.442695, %v446_v28  ;;  %v579_v43 = vunpack.c.0.s8 %v1193_v40  ;;  %v533_v1 = vpop.permute.xlu1 %532  ;;  %v553_v27 = vpop.permute.xlu0 %552 }
 0x100   : > { %832 = vpow2.f32 %v717_v12 }
 0x101   : > { %834 = vpow2.f32 %v718_v29  ;;  %v582_v40 = vsub.s32 %v579_v43, %v1139_v17 }
 0x102   : > { %836 = vpow2.f32 %v719_v30 }
 0x103   : > { %838 = vpow2.f32 %v720_v14 }
 0x10d   : > { %v833_v20 = vpop.eup %832 }
 0x10e   : > { %v835_v26 = vpop.eup %834  ;;  %v459_v31 = vadd.f32 1.0, %v833_v20 }
 0x10f   : > { %v837_v32 = vpop.eup %836  ;;  %v460_v33 = vadd.f32 1.0, %v835_v26 }
 0x110   : > { %v839_v34 = vpop.eup %838  ;;  %v461_v35 = vadd.f32 1.0, %v837_v32  ;;  %840 = vrcp.f32 %v459_v31 }
 0x111   : > { %v462_v37 = vadd.f32 1.0, %v839_v34  ;;  %842 = vrcp.f32 %v460_v33 }
 0x112   : > { %844 = vrcp.f32 %v461_v35 }
 0x113   : > { %846 = vrcp.f32 %v462_v37 }
 0x11d   : > { %v841_v42 = vpop.eup %840 }
 0x11e   : > { %v843_v44 = vpop.eup %842  ;;  %v479_v45 = vmul.f32 %v841_v42, %v477_v36  ;;  %v515_v46 = vrot.slane %v841_v42, 2  ;;  %v495_v47 = vrot.slane %v841_v42, 1  ;;  %v535_v48 = vrot.slane %v841_v42, 3 }
 0x11f   : > { %v845_v49 = vpop.eup %844  ;;  %v480_v50 = vmul.f32 %v843_v44, %v477_v36  ;;  %v516_v51 = vrot.slane %v843_v44, 2  ;;  %v496_v52 = vrot.slane %v843_v44, 1  ;;  %v536_v18 = vrot.slane %v843_v44, 3 }
 0x120   : > { %v847_v53 = vpop.eup %846  ;;  %v481_v54 = vmul.f32 %v845_v49, %v477_v36  ;;  %v483_v19 = vadd.f32 %v479_v45, %v473_v38  ;;  %v517_v55 = vrot.slane %v845_v49, 2  ;;  %v523_v56 = vmul.f32 %v515_v46, %v513_v41 }
 0x121   : > { %v482_v58 = vmul.f32 %v847_v53, %v477_v36  ;;  %v484_v59 = vadd.f32 %v480_v50, %v473_v38  ;;  %v518_v60 = vrot.slane %v847_v53, 2  ;;  %v524_v61 = vmul.f32 %v516_v51, %v513_v41 }
 0x122   : > { %v485_v62 = vadd.f32 %v481_v54, %v473_v38  ;;  %v525_v63 = vmul.f32 %v517_v55, %v513_v41  ;;  %v497_v23 = vrot.slane %v845_v49, 1  ;;  %v498_v0 = vrot.slane %v847_v53, 1 }
 0x123   : > { %v486_v2 = vadd.f32 %v482_v58, %v473_v38  ;;  %v526_v3 = vmul.f32 %v518_v60, %v513_v41  ;;  %v503_v4 = vmul.f32 %v495_v47, %v489_v57  ;;  %v504_v5 = vmul.f32 %v496_v52, %v489_v57 }
 0x124   : > { %v505_v6 = vmul.f32 %v497_v23, %v489_v57  ;;  %v506_v24 = vmul.f32 %v498_v0, %v489_v57  ;;  %v537_v7 = vrot.slane %v845_v49, 3  ;;  %v538_v8 = vrot.slane %v847_v53, 3 }
 0x125   : > { %v507_v9 = vadd.f32 %v503_v4, %v483_v19  ;;  %v508_v10 = vadd.f32 %v504_v5, %v484_v59  ;;  %v543_v11 = vmul.f32 %v535_v48, %v533_v1  ;;  %v544_v13 = vmul.f32 %v536_v18, %v533_v1 }
 0x126   : > { %v509_v15 = vadd.f32 %v505_v6, %v485_v62  ;;  %v510_v21 = vadd.f32 %v506_v24, %v486_v2  ;;  %v545_v22 = vmul.f32 %v537_v7, %v533_v1  ;;  %v546_v25 = vmul.f32 %v538_v8, %v533_v1 }
 0x127   : > { %v527_v28 = vadd.f32 %v523_v56, %v507_v9  ;;  %v528_v12 = vadd.f32 %v524_v61, %v508_v10  ;;  %v555_v29 = vrot.slane %v841_v42, 4  ;;  %v556_v30 = vrot.slane %v843_v44, 4 }
 0x128   : > { %v529_v14 = vadd.f32 %v525_v63, %v509_v15  ;;  %v530_v20 = vadd.f32 %v526_v3, %v510_v21  ;;  %v557_v26 = vrot.slane %v845_v49, 4  ;;  %v558_v31 = vrot.slane %v847_v53, 4 }
 0x129   : > { %v547_v32 = vadd.f32 %v543_v11, %v527_v28  ;;  %v548_v33 = vadd.f32 %v544_v13, %v528_v12  ;;  %v563_v34 = vmul.f32 %v555_v29, %v553_v27  ;;  %v564_v35 = vmul.f32 %v556_v30, %v553_v27 }
 0x12a   : > { %v549_v36 = vadd.f32 %v545_v22, %v529_v14  ;;  %v550_v37 = vadd.f32 %v546_v25, %v530_v20  ;;  %v565_v38 = vmul.f32 %v557_v26, %v553_v27  ;;  %v566_v39 = vmul.f32 %v558_v31, %v553_v27 }
 0x12b   : > { %v567_v41 = vadd.f32 %v563_v34, %v547_v32  ;;  %v568_v45 = vadd.f32 %v564_v35, %v548_v33 }
 0x12c   : > { %v569_v42 = vadd.f32 %v565_v38, %v549_v36  ;;  %v570_v44 = vadd.f32 %v566_v39, %v550_v37 }
 0x12d   : > { %v575_v46 = vcombine.low %v567_v41, %v568_v45 }
 0x12e   : > { %v576_v47 = vcombine.low %v569_v42, %v570_v44 }
 0x12f   : > { %v583_v48 = vrot.slane %v575_v46, %v582_v40 }
 0x130   : > { %v590_v49 = vrot.slane %v576_v47, %v582_v40 }
 0x132   : > { %v591_v50 = vcombine.low %v583_v48, %v590_v49 }
 0x134   : > { %v598_v51 = vrot.slane %v591_v50, %v582_v40 }
 0x136   : > { %604 = vst.msk [vmem:[%s172_s7] sm:$0xf] %vm602_vm0, %v598_v51 }
 0x137   : > { %915 = shalt.err (!%p912_p3)
}
 0x138   : > { %s916_s27 = scalar_lea.hbm %s618_s22, 64  ;;  %s920_s4 = scalar_lea.hbm %s1235_s2, 256 }
 0x139   : > { %p917_p11 = scmp.ne.s32.totalorder %s618_s22, %s916_s27  ;;  %p921_p9 = scmp.lt.s32.totalorder %s618_s22, %s1235_s2 }
 0x13a   : > { %p922_p6 = scmp.lt.s32.totalorder %s920_s4, %s916_s27 }
 0x13b   : > { %p918_p5 = pnand %p917_p11, %p1252_p13 }
 0x13c   : > { %p923_p4 = por %p922_p6, %p921_p9 }
 0x13d   : > { %p919_p7 = pneg %p918_p5 }
 0x13f   : > { %p924_p8 = pnand %p923_p4, %p919_p7 }
 0x141   : > { %927 = shalt.err (!%p924_p8)
}
 0x142   : > { %734 = dma.vmem_to_hbm [thread:$0]  (%p1252_p13), %s621_s14, 64, %s618_s22, %s606_s23  }
 0x143 PF: > { %p751_p10 = scmp.ge.s32.totalorder %s970_s12, 2  ;;  %s632_s8 = sand.u32 1, %s958_s9  }
 0x144   : > { %p1253_p12 = scmp.ne.s32.totalorder %s1241_s16, 0  ;;  %s633_s18 = scalar_lea.sflag [#allocation4], %s632_s8 }
 0x146   : > { %p745_p1 = pnand %p751_p10, %p1253_p12 }
 0x148   : > { %p746_p2 = pneg %p745_p1 }
 0x14a   : > { %953 = dma.done.wait (%p746_p2), %s633_s18, 64  }
 0x14b   : > { %955 = vsyncadd (%p746_p2), %s633_s18, 4294967232  ;;  %p16_p0 = scmp.ge.s32.totalorder %s1053_s20, 6   ;;  %s1254_s9 = smov %s962_s10 }
 0x14c   : > { %s1255_s10 = smov %s966_s11  ;;  %s1256_s11 = smov %s1080_s28 }
 0x14d   : > { %s1257_s12 = smov %s1053_s20  ;;  %18 = sbr.rel (!%p16_p0) target bundleno = 6 (0x6), region = 78 }
 0x152   :  { %638 = vsyncpa [#allocation3], 1 }
 0x153   :  { %640 = vsyncpa [#allocation3 + $0x1], 1 }
 0x154   :  { %641 = vsyncpa [#allocation6], 1 }
 0x155   :  { %643 = vsyncpa [#allocation6 + $0x1], 1 }
 0x156   :  { %644 = vsyncpa [#allocation4], 1 }
 0x157   :  { %646 = vsyncpa [#allocation4 + $0x1], 1 }

</bundles_post_ra>
